<compile_context>
chip_gen: v6e
topology: v6e:2x2x1
jax: 0.10.0
libtpu: 0.0.40
codegen_flags: <defaults>
</compile_context>

<pallas_src>
import jax
import jax.numpy as jnp
from jax.experimental import pallas as pl
from jax.experimental.pallas import tpu as pltpu


def _feature_conv_kernel(x_ref, w_ref, s_ref, b_ref, o_ref):
    # x_ref : (C_in, TL)    native-layout lane tile of x (native dtype)
    # w_ref : (C_out, C_in) conv weight with BN1 scale folded in (compute dtype)
    # s_ref : (C_out, 1)    BN2 scale, f32 (applied to the f32 accumulator)
    # b_ref : (C_out, 1)    folded bias, f32
    # o_ref : (C_out, TL)
    x = x_ref[...].astype(w_ref.dtype)               # in-kernel cast (hidden by DMA)
    acc = jnp.dot(w_ref[...], x, preferred_element_type=jnp.float32)  # MXU, f32 acc
    y = acc * s_ref[...] + b_ref[...]                # BN2 scale + folded bias (f32)
    o_ref[...] = jnp.maximum(y, 0.0).astype(o_ref.dtype)             # ReLU + cast


def feature_conv(x, weight, bn1, bn2, *, eps=1e-5,
                 compute_dtype=jnp.bfloat16, out_dtype=None,
                 max_lane_tile=8192, tile_target_bytes=8 << 20,
                 min_pallas_elems=4096):
    """x: (N, C_in, L). weight: (C_out, C_in). bn* = (gamma, beta, mean, var)."""
    N, C_in, L = x.shape
    C_out = weight.shape[0]
    out_dtype = x.dtype if out_dtype is None else out_dtype

    # ---- fold BN1 / BN2 (eval mode) into weight / scale / bias, exact in f32 ----
    def fold(gamma, beta, mean, var):
        s = gamma.astype(jnp.float32) / jnp.sqrt(var.astype(jnp.float32) + eps)
        b = beta.astype(jnp.float32) - mean.astype(jnp.float32) * s
        return s, b

    s1, b1 = fold(*bn1)                                   # (C_in,)
    s2, b2 = fold(*bn2)                                   # (C_out,)
    w32 = weight.astype(jnp.float32)
    w_fold = (w32 * s1[None, :]).astype(compute_dtype)    # (C_out, C_in), BN1 folded
    s2_col = s2.reshape(C_out, 1)                         # f32, applied in-kernel
    b_fold = (s2 * (w32 @ b1) + b2).reshape(C_out, 1)     # f32

    # ---- tiny-shape fallback: pallas launch overhead dwarfs the work ----
    if N * C_out * L < min_pallas_elems:
        y = jnp.einsum("oc,ncl->nol",
                       w_fold.astype(jnp.float32), x.astype(jnp.float32))
        y = y * s2_col.reshape(1, C_out, 1) + b_fold.reshape(1, C_out, 1)
        return jnp.maximum(y, 0.0).astype(out_dtype)

    # ---- adaptive lane tile over L (native layouts, no wrapper reshuffle) ----
    x_item = jnp.dtype(x.dtype).itemsize
    o_item = jnp.dtype(out_dtype).itemsize
    bytes_per_lane = 2 * (C_in * x_item + C_out * o_item)       # double-buffered
    tl = int(min(max_lane_tile, max(tile_target_bytes // bytes_per_lane, 128)))
    if tl >= L:
        TL = L                                   # full L in one block (always legal)
    else:
        TL = max(128, (tl // 128) * 128)         # 128-aligned lane tile
    grid = (N, pl.cdiv(L, TL))

    # ---- VMEM budget: double-buffered tiles + params, headroom, 32 MiB cap ----
    tile_bytes = 2 * TL * (C_in * x_item + C_out * o_item)
    param_bytes = 2 * C_out * C_in * jnp.dtype(compute_dtype).itemsize + 4 * C_out * 8
    vmem_bytes = int(min(max(2 * (tile_bytes + param_bytes), 4 << 20), 32 << 20))

    return pl.pallas_call(
        _feature_conv_kernel,
        out_shape=jax.ShapeDtypeStruct((N, C_out, L), out_dtype),
        grid_spec=pltpu.PrefetchScalarGridSpec(
            num_scalar_prefetch=0,
            grid=grid,
            in_specs=[
                pl.BlockSpec((None, C_in, TL), lambda n, l: (n, 0, l)),
                pl.BlockSpec((C_out, C_in), lambda n, l: (0, 0)),
                pl.BlockSpec((C_out, 1), lambda n, l: (0, 0)),
                pl.BlockSpec((C_out, 1), lambda n, l: (0, 0)),
            ],
            out_specs=pl.BlockSpec((None, C_out, TL), lambda n, l: (n, 0, l)),
        ),
        compiler_params=pltpu.CompilerParams(
            dimension_semantics=("parallel", "parallel"),
            vmem_limit_bytes=vmem_bytes),
    )(x, w_fold, s2_col, b_fold)


def _reference(x, weight, bn1, bn2, eps=1e-5):
    def bn(v, gamma, beta, mean, var):
        return (v - mean[None, :, None]) / jnp.sqrt(var[None, :, None] + eps) \
               * gamma[None, :, None] + beta[None, :, None]
    h = bn(x, *bn1)
    h = jnp.einsum("oc,ncl->nol", weight, h)
    h = bn(h, *bn2)
    return jnp.maximum(h, 0.0)


def _make_inputs(key, N, C_in, C_out, L):
    ks = jax.random.split(key, 10)
    x = jax.random.normal(ks[0], (N, C_in, L), dtype=jnp.float32)
    weight = jax.random.normal(ks[1], (C_out, C_in), dtype=jnp.float32) * 0.1
    bn1 = (jax.random.normal(ks[2], (C_in,)) * 0.1 + 1.0,
           jax.random.normal(ks[3], (C_in,)) * 0.1,
           jax.random.normal(ks[4], (C_in,)) * 0.1,
           jax.random.uniform(ks[5], (C_in,)) + 0.5)
    bn2 = (jax.random.normal(ks[6], (C_out,)) * 0.1 + 1.0,
           jax.random.normal(ks[7], (C_out,)) * 0.1,
           jax.random.normal(ks[8], (C_out,)) * 0.1,
           jax.random.uniform(ks[9], (C_out,)) + 0.5)
    return x, weight, bn1, bn2


if __name__ == "__main__":
    key = jax.random.PRNGKey(0)

    # --- tiny shape (matches the module's typical first-layer inputs):
    #     exercises the small-shape XLA fallback path.
    N, C_in, C_out, L = 2, 4, 8, 16
    x, weight, bn1, bn2 = _make_inputs(key, N, C_in, C_out, L)
    ref = _reference(x, weight, bn1, bn2)
    out = feature_conv(x, weight, bn1, bn2, compute_dtype=jnp.float32)
    out = jax.block_until_ready(out)
    assert out.shape == (N, C_out, L)
    assert jnp.allclose(out, ref, atol=1e-4, rtol=1e-4)

    # --- small shape that goes through the Pallas kernel (single L tile,
    #     2 parallel grid steps over N).
    N1, C1, O1, L1 = 2, 16, 32, 256
    x1, w1, bn1_1, bn2_1 = _make_inputs(jax.random.PRNGKey(1), N1, C1, O1, L1)
    ref1 = _reference(x1, w1, bn1_1, bn2_1)

    out1_f32 = feature_conv(x1, w1, bn1_1, bn2_1, compute_dtype=jnp.float32)
    out1_f32 = jax.block_until_ready(out1_f32)
    assert out1_f32.shape == (N1, O1, L1)
    assert jnp.allclose(out1_f32, ref1, atol=1e-4, rtol=1e-4)

    out1_bf16 = feature_conv(x1, w1, bn1_1, bn2_1)   # bf16 compute, f32 acc
    out1_bf16 = jax.block_until_ready(out1_bf16)
    assert out1_bf16.shape == (N1, O1, L1)
    assert jnp.allclose(out1_bf16, ref1, atol=5e-2, rtol=5e-2)

    # --- larger shape exercising the tiled / pipelined path (N x L-tile grid) ---
    N2, C2, O2, L2 = 4, 64, 128, 1024
    x2, w2, bn1_2, bn2_2 = _make_inputs(jax.random.PRNGKey(2), N2, C2, O2, L2)
    ref2 = _reference(x2, w2, bn1_2, bn2_2)

    out2_f32 = feature_conv(x2, w2, bn1_2, bn2_2, compute_dtype=jnp.float32)
    out2_f32 = jax.block_until_ready(out2_f32)
    assert out2_f32.shape == (N2, O2, L2)
    assert jnp.allclose(out2_f32, ref2, atol=1e-4, rtol=1e-4)

    out2_bf16 = feature_conv(x2, w2, bn1_2, bn2_2)
    out2_bf16 = jax.block_until_ready(out2_bf16)
    assert out2_bf16.shape == (N2, O2, L2)
    assert jnp.allclose(out2_bf16, ref2, atol=1.5e-1, rtol=1.5e-1)

    # force multiple L tiles (grid (4, 2)) to exercise lane tiling explicitly
    out2_tiled = feature_conv(x2, w2, bn1_2, bn2_2, max_lane_tile=512)
    out2_tiled = jax.block_until_ready(out2_tiled)
    assert jnp.allclose(out2_tiled, ref2, atol=1.5e-1, rtol=1.5e-1)

    print("KERNEL_OK")
</pallas_src>

<mosaic_0001>
module attributes {stable_mosaic.version = 11 : i64} {
  func.func @_feature_conv_kernel(%arg0: i32, %arg1: i32, %arg2: memref<1x16x256xf32, #tpu.memory_space<vmem>>, %arg3: memref<32x16xf32, #tpu.memory_space<vmem>>, %arg4: memref<32x1xf32, #tpu.memory_space<vmem>>, %arg5: memref<32x1xf32, #tpu.memory_space<vmem>>, %arg6: memref<1x32x256xf32, #tpu.memory_space<vmem>>) attributes {dimension_semantics = [#tpu.dimension_semantics<parallel>, #tpu.dimension_semantics<parallel>], iteration_bounds = array<i64: 2, 1>, scalar_prefetch = 0 : i64, scratch_operands = 0 : i64, tpu.core_type = #tpu.core_type<tc>, window_params = [{transform_indices = @transform_0, window_bounds = array<i64: 1, 16, 256>}, {pipeline_mode = #tpu.pipeline_mode<synchronous>, transform_indices = @transform_1, window_bounds = array<i64: 32, 16>}, {pipeline_mode = #tpu.pipeline_mode<synchronous>, transform_indices = @transform_2, window_bounds = array<i64: 32, 1>}, {pipeline_mode = #tpu.pipeline_mode<synchronous>, transform_indices = @transform_3, window_bounds = array<i64: 32, 1>}, {transform_indices = @transform_4, window_bounds = array<i64: 1, 32, 256>}]} {
    %c0 = arith.constant 0 : index
    %c0_0 = arith.constant 0 : index
    %c0_1 = arith.constant 0 : index
    %0 = vector.load %arg2[%c0, %c0_0, %c0_1] : memref<1x16x256xf32, #tpu.memory_space<vmem>>, vector<1x16x256xf32>
    %1 = vector.shape_cast %0 : vector<1x16x256xf32> to vector<16x256xf32>
    %c0_2 = arith.constant 0 : index
    %c0_3 = arith.constant 0 : index
    %2 = vector.load %arg3[%c0_2, %c0_3] : memref<32x16xf32, #tpu.memory_space<vmem>>, vector<32x16xf32>
    %cst = arith.constant dense<0.000000e+00> : vector<32x256xf32>
    %3 = tpu.matmul %2, %1, %cst {dimension_numbers = #tpu.dot_dimension_numbers<[1], [0], [0], [1], [0, 0, 1, 1], [], []>} : vector<32x16xf32>, vector<16x256xf32>, vector<32x256xf32> -> vector<32x256xf32>
    %c0_4 = arith.constant 0 : index
    %c0_5 = arith.constant 0 : index
    %4 = vector.load %arg4[%c0_4, %c0_5] : memref<32x1xf32, #tpu.memory_space<vmem>>, vector<32x1xf32>
    %5 = vector.broadcast %4 : vector<32x1xf32> to vector<32x256xf32>
    %6 = arith.mulf %3, %5 : vector<32x256xf32>
    %c0_6 = arith.constant 0 : index
    %c0_7 = arith.constant 0 : index
    %7 = vector.load %arg5[%c0_6, %c0_7] : memref<32x1xf32, #tpu.memory_space<vmem>>, vector<32x1xf32>
    %8 = vector.broadcast %7 : vector<32x1xf32> to vector<32x256xf32>
    %9 = arith.addf %6, %8 : vector<32x256xf32>
    %cst_8 = arith.constant 0.000000e+00 : f32
    %10 = vector.broadcast %cst_8 : f32 to vector<32x256xf32>
    %11 = arith.maximumf %9, %10 : vector<32x256xf32>
    %c0_9 = arith.constant 0 : index
    %c0_10 = arith.constant 0 : index
    %c0_11 = arith.constant 0 : index
    %12 = vector.load %arg6[%c0_9, %c0_10, %c0_11] : memref<1x32x256xf32, #tpu.memory_space<vmem>>, vector<1x32x256xf32>
    %13 = vector.shape_cast %12 : vector<1x32x256xf32> to vector<32x256xf32>
    %14 = vector.shape_cast %11 : vector<32x256xf32> to vector<1x32x256xf32>
    tpu.vector_store %arg6[%c0_9, %c0_10, %c0_11], %14 {strides = array<i32>} : memref<1x32x256xf32, #tpu.memory_space<vmem>>, vector<1x32x256xf32>,
    return
  }
  func.func @transform_0(%arg0: i32, %arg1: i32) -> (i32, i32, i32) {
    %c0_i32 = arith.constant 0 : i32
    %c0_i32_0 = arith.constant 0 : i32
    return %arg0, %c0_i32, %arg1 : i32, i32, i32
  }
  func.func @transform_1(%arg0: i32, %arg1: i32) -> (i32, i32) {
    %c0_i32 = arith.constant 0 : i32
    %c0_i32_0 = arith.constant 0 : i32
    %c0_i32_1 = arith.constant 0 : i32
    return %c0_i32, %c0_i32_0 : i32, i32
  }
  func.func @transform_2(%arg0: i32, %arg1: i32) -> (i32, i32) {
    %c0_i32 = arith.constant 0 : i32
    %c0_i32_0 = arith.constant 0 : i32
    %c0_i32_1 = arith.constant 0 : i32
    return %c0_i32, %c0_i32_0 : i32, i32
  }
  func.func @transform_3(%arg0: i32, %arg1: i32) -> (i32, i32) {
    %c0_i32 = arith.constant 0 : i32
    %c0_i32_0 = arith.constant 0 : i32
    %c0_i32_1 = arith.constant 0 : i32
    return %c0_i32, %c0_i32_0 : i32, i32
  }
  func.func @transform_4(%arg0: i32, %arg1: i32) -> (i32, i32, i32) {
    %c0_i32 = arith.constant 0 : i32
    %c0_i32_0 = arith.constant 0 : i32
    return %arg0, %c0_i32, %arg1 : i32, i32, i32
  }
}

</mosaic_0001>

<bundles_post_ra>
// kernel: tpu_custom_call.1
= control target key start
LH: loop header
LB: loop body
LE: loop exit
PB: predicated region body
PF: predicated region fallthrough
CT: control target
= control target key end

     0   :  { %9 = vsyncpa [#allocation3], 0  ;;  %s862_s0 = inlined_call_operand.vmem [shape: f32[2,16,256], index: 0, kind: input, shape index: {}]   ;;  %s863_s1 = inlined_call_operand.vmem [shape: f32[32,16], index: 1, kind: input, shape index: {}]   ;;  %s864_s2 = inlined_call_operand.vmem [shape: f32[32,1], index: 2, kind: input, shape index: {}]   ;;  %s865_s3 = inlined_call_operand.vmem [shape: f32[32,1], index: 3, kind: input, shape index: {}]   ;;  %s866_s4 = inlined_call_operand.hbm [shape: f32[2,32,256], index: 4, kind: output, shape index: {}]  }
   0x1   :  { %11 = vsyncpa [#allocation3 + $0x1], 0  ;;  %s704_s15 = smov 0   ;;  %s706_s16 = smov 0  }
   0x2   :  { %s708_s17 = smov 0   ;;  %s710_s18 = smov 0  }
   0x3   :  { %s712_s19 = smov 0   ;;  %s714_s20 = smov 0  }
   0x4 LB: > { %s512_s21 = sadd.s32 4294967295, %s672_s20   ;;  %s513_s22 = sadd.s32 4294967294, %s672_s20   ;;  %s672_s20 = sphi %s714_s20, %s17_s20   ;;  %s668_s19 = sphi %s712_s19, %s873_s19   ;;  %s664_s18 = sphi %s710_s18, %s872_s18   ;;  %s660_s17 = sphi %s708_s17, %s871_s17   ;;  %s656_s16 = sphi %s706_s16, %s870_s16   ;;  %s652_s15 = sphi %s704_s15, %s869_s15  }
   0x5   : > { %s29_s23 = sadd.s32 1, %s668_s19  ;;  %s129_s24 = sadd.s32 1, %s660_s17 }
   0x6   : > { %p31_p0 = scmp.ge.s32.totalorder %s29_s23, 2  ;;  %p139_p1 = scmp.ne.s32.totalorder %s660_s17, %s656_s16 }
   0x7   : > { %p140_p2 = scmp.eq.s32.totalorder %s512_s21, 1  ;;  %p145_p3 = scmp.ne.s32.totalorder %s656_s16, %s652_s15 }
   0x8   : > { %s875_s23 = smov (%p31_p0, %s29_s23), 0  ;;  %p146_p5 = scmp.eq.s32.totalorder %s513_s22, 1 }
   0x9   : > { %p744_p4 = por %p140_p2, %p139_p1  ;;  %s124_s26 = ssub.s32 %s668_s19, %s875_s23 }
   0xa   : > { %p516_p6 = scmp.ge.s32.totalorder %s672_s20, 1  ;;  %p127_p7 = scmp.eq.s32.totalorder %s124_s26, 0 }
   0xb   : > { %p751_p8 = por %p146_p5, %p145_p3  ;;  %p186_p9 = scmp.lt.s32.totalorder %s672_s20, 3 }
   0xc   : > { %s757_s28 = scalar_select %p127_p7, %s660_s17, %s129_s24  }
   0xd   : > { %p187_p10 = pnand %p516_p6, %p186_p9 }
   0xe   : > { %p217_p11 = scmp.lt.s32.totalorder (!%p187_p10), %s664_s18, 1  ;;  %s213_s22 = sand.u32 (!%p187_p10), 1, %s656_s16  }
   0xf   : > { %190 = sbr.rel (%p187_p10) target bundleno = 248 (0xf8), region = 36  ;;  %s517_s24 = sshll.u32 (!%p187_p10), %s213_s22, 6 }
  0x10   : > { %s215_s26 = scalar_lea.vmem (!%p187_p10), [#allocation2], %s517_s24  ;;  %s530_s29 = sshll.u32 (!%p187_p10), %s664_s18, 10 }
  0x11   : > { %s433_s30 = sshll.u32 (!%p187_p10), %s215_s26, 4  ;;  %s676_s9 = smov (!%p187_p10), [#allocation2]   ;;  %s813_s30 = int_to_ptr.vmem [resolvable:$true] %s433_s30 }
  0x12   : > { %s600_s10 = sshll.u32 (!%p187_p10), %s676_s9, 4  ;;  %s601_s10 = int_to_ptr.vmem [resolvable:$false] %s600_s10 }
  0x13   : > { %p603_p1 = scmp.lt.s32.totalorder (!%p187_p10), %s813_s30, %s601_s10 }
  0x14   : > { %v674_v0 = vmov 0.0   ;;  %v339_v1 = vld [vmem:[%s864_s2 + $0x10] sm:$0xff]  ;;  %v337_v2 = vld [vmem:[%s864_s2] sm:$0xff]  ;;  %s218_s7 = scalar_select %p217_p11, %s664_s18, 1  ;;  %v675_v3 = vmov 0   ;;  %vm235_vm0 = vcmask 130048  }
  0x15   : > { %312 = vmatprep.mubr.f32.mxu0 %v674_v0  ;;  %324 = vmatprep.mubr.f32.mxu1 %v674_v0  ;;  %v231_v8 = vld [vmem:[%s863_s1] sm:$0xff]  ;;  %v233_v9 = vld [vmem:[%s863_s1 + $0x10] sm:$0xff]  ;;  %v340_v10 = vld [vmem:[%s864_s2 + $0x18] sm:$0xff]  ;;  %s817_s18 = scalar_lea.sflag [#allocation3], %s213_s22 }
  0x16   : > { %595 = vset.pattern.permute.xlu1 %v675_v3  ;;  %594 = vset.pattern.permute.xlu0 %v675_v3  ;;  %s529_s8 = sshll.u32 %s218_s7, 5  ;;  %v338_v11 = vld [vmem:[%s864_s2 + $0x8] sm:$0xff]  ;;  %v234_v13 = vld [vmem:[%s863_s1 + $0x18] sm:$0xff]  ;;  %v369_v15 = vld [vmem:[%s865_s3] sm:$0xff]  ;;  %s811_s7 = scalar_lea.hbm %s866_s4, %s530_s29 }
  0x17   : > { %353 = vperm.xlu1 %595, %v339_v1   ;;  %343 = vperm.xlu0 %594, %v337_v2   ;;  %s224_s11 = scalar_lea.vmem %s862_s0, %s529_s8  ;;  %v232_v12 = vld [vmem:[%s863_s1 + $0x8] sm:$0xff]  ;;  %v372_v16 = vld [vmem:[%s865_s3 + $0x18] sm:$0xff]  ;;  %v371_v17 = vld [vmem:[%s865_s3 + $0x10] sm:$0xff]  ;;  %s596_s8 = scalar_lea.vmem %s813_s30, 1024 }
  0x18   : > { %v230_v4 = vld [vmem:[%s224_s11 + $0x18] sm:$0xff]  ;;  %v229_v5 = vld [vmem:[%s224_s11 + $0x10] sm:$0xff]  ;;  %v228_v6 = vld [vmem:[%s224_s11 + $0x8] sm:$0xff]  ;;  %p597_p12 = scmp.ne.s32.totalorder %s813_s30, %s596_s8 }
  0x19   : > { %276 = vmatprep.subr.mxu0 %v230_v4  ;;  %531 = vmatprep.subr.mxu1 %v230_v4  ;;  %v227_v7 = vld [vmem:[%s224_s11] sm:$0xff]  ;;  %v370_v14 = vld [vmem:[%s865_s3 + $0x8] sm:$0xff]  ;;  %s602_s11 = scalar_lea.vmem %s601_s10, 2048 }
  0x1a   : > { %277 = vmatpush1.msra.mxu0 %v229_v5  ;;  %533 = vmatpush1.msra.mxu1 %v229_v5  ;;  %p598_p13 = pnand %p597_p12, %p744_p4  ;;  %p604_p2 = scmp.lt.s32.totalorder %s602_s11, %s596_s8 }
  0x1b   : > { %278 = vmatprep.subr.mxu0 %v228_v6  ;;  %532 = vmatprep.subr.mxu1 %v228_v6 }
  0x1c   : > { %279 = vmatpush1.msra.mxu0 %v227_v7  ;;  %534 = vmatpush1.msra.mxu1 %v227_v7  ;;  %p599_p0 = pneg %p598_p13  ;;  %p605_p3 = por %p604_p2, %p603_p1 }
  0x1d   : > { %520 = vmatmul.mubr.msk.f32.vlgmr.msra.gmra.mxu0 %vm235_vm0, %v231_v8  ;;  %522 = vmatmul.mubr.msk.f32.vlgmr.msra.gmra.mxu1 %vm235_vm0, %v233_v9 }
  0x1e   : > { %318 = vmatprep.mubr.f32.mxu0 %v674_v0  ;;  %330 = vmatprep.mubr.f32.mxu1 %v674_v0  ;;  %p606_p5 = pnand %p605_p3, %p599_p0 }
  0x1f   : > { %358 = vperm.xlu1 %595, %v340_v10   ;;  %348 = vperm.xlu0 %594, %v338_v11  }
  0x21   : > { %521 = vmatmul.mubr.msk.f32.gmra.mxu0 %vm235_vm0, %v232_v12  ;;  %523 = vmatmul.mubr.msk.f32.gmra.mxu1 %vm235_vm0, %v234_v13 }
  0x23   : > { %380 = vperm.xlu1 %595, %v370_v14   ;;  %375 = vperm.xlu0 %594, %v369_v15  }
  0x27   : > { %390 = vperm.xlu1 %595, %v372_v16   ;;  %385 = vperm.xlu0 %594, %v371_v17  }
  0x92   : > { %v344_v18 = vpop.permute.xlu0 %343  ;;  %v354_v19 = vpop.permute.xlu1 %353 }
  0x9a   : > { %v349_v20 = vpop.permute.xlu0 %348  ;;  %v359_v21 = vpop.permute.xlu1 %358 }
  0x9e   : > { %v376_v22 = vpop.permute.xlu0 %375  ;;  %v381_v25 = vpop.permute.xlu1 %380 }
  0xa2   : > { %v386_v26 = vpop.permute.xlu0 %385  ;;  %v391_v45 = vpop.permute.xlu1 %390 }
  0xdd   : > { %v314_v23 = vpop.f32.mrf.mxu0  ;;  %v326_v24 = vpop.f32.mrf.mxu1 }
  0xde   : > { %v361_v27 = vmul.f32 %v344_v18, %v314_v23  ;;  %v365_v28 = vmul.f32 %v354_v19, %v326_v24 }
  0xdf   : > { %v316_v29 = vpop.f32.mrf.mxu0  ;;  %v328_v30 = vpop.f32.mrf.mxu1 }
  0xe0   : > { %v393_v31 = vadd.f32 %v376_v22, %v361_v27  ;;  %v397_v32 = vadd.f32 %v386_v26, %v365_v28  ;;  %v362_v33 = vmul.f32 %v344_v18, %v316_v29  ;;  %v366_v34 = vmul.f32 %v354_v19, %v328_v30 }
  0xe1   : > { %v320_v35 = vpop.f32.mrf.mxu0  ;;  %v332_v36 = vpop.f32.mrf.mxu1 }
  0xe2   : > { %v401_v37 = vmax.f32 %v393_v31, 0.0  ;;  %v405_v38 = vmax.f32 %v397_v32, 0.0  ;;  %v394_v39 = vadd.f32 %v376_v22, %v362_v33  ;;  %v398_v40 = vadd.f32 %v386_v26, %v366_v34 }
  0xe3   : > { %v363_v41 = vmul.f32 %v349_v20, %v320_v35  ;;  %v367_v42 = vmul.f32 %v359_v21, %v332_v36  ;;  %v322_v43 = vpop.f32.mrf.mxu0  ;;  %v334_v44 = vpop.f32.mrf.mxu1 }
  0xe4   : > { %409 = vst [vmem:[%s215_s26] sm:$0xff] %v401_v37  ;;  %413 = vst [vmem:[%s215_s26 + $0x20] sm:$0xff] %v405_v38  ;;  %v402_v46 = vmax.f32 %v394_v39, 0.0  ;;  %v406_v47 = vmax.f32 %v398_v40, 0.0  ;;  %v364_v48 = vmul.f32 %v349_v20, %v322_v43  ;;  %v368_v49 = vmul.f32 %v359_v21, %v334_v44 }
  0xe5   : > { %v395_v50 = vadd.f32 %v381_v25, %v363_v41  ;;  %v399_v51 = vadd.f32 %v391_v45, %v367_v42 }
  0xe6   : > { %410 = vst [vmem:[%s215_s26 + $0x8] sm:$0xff] %v402_v46  ;;  %414 = vst [vmem:[%s215_s26 + $0x28] sm:$0xff] %v406_v47  ;;  %v396_v52 = vadd.f32 %v381_v25, %v364_v48  ;;  %v400_v53 = vadd.f32 %v391_v45, %v368_v49 }
  0xe7   : > { %v403_v54 = vmax.f32 %v395_v50, 0.0  ;;  %v407_v55 = vmax.f32 %v399_v51, 0.0 }
  0xe8   : > { %v404_v56 = vmax.f32 %v396_v52, 0.0  ;;  %v408_v57 = vmax.f32 %v400_v53, 0.0 }
  0xe9   : > { %411 = vst [vmem:[%s215_s26 + $0x10] sm:$0xff] %v403_v54  ;;  %415 = vst [vmem:[%s215_s26 + $0x30] sm:$0xff] %v407_v55 }
  0xea   : > { %412 = vst [vmem:[%s215_s26 + $0x18] sm:$0xff] %v404_v56  ;;  %416 = vst [vmem:[%s215_s26 + $0x38] sm:$0xff] %v408_v57 }
  0xeb   : > { %609 = shalt.err (!%p606_p5)
}
  0xec   : > { %s610_s12 = scalar_lea.hbm %s811_s7, 1024  ;;  %s614_s21 = scalar_lea.hbm %s866_s4, 2048 }
  0xed   : > { %p611_p6 = scmp.ne.s32.totalorder %s811_s7, %s610_s12  ;;  %p615_p10 = scmp.lt.s32.totalorder %s811_s7, %s866_s4 }
  0xee   : > { %p616_p11 = scmp.lt.s32.totalorder %s614_s21, %s610_s12 }
  0xef   : > { %p612_p7 = pnand %p611_p6, %p744_p4 }
  0xf0   : > { %p617_p12 = por %p616_p11, %p615_p10 }
  0xf1   : > { %p613_p9 = pneg %p612_p7 }
  0xf3   : > { %p618_p13 = pnand %p617_p12, %p613_p9 }
  0xf5   : > { %621 = shalt.err (!%p618_p13)
}
  0xf6   : > { %s677_s26 = smov 256   ;;  %s678_s29 = smov 16  }
  0xf7   : > { %535 = dma.vmem_to_hbm [thread:$0]  (%p744_p4), %s813_s30, 1024, %s811_s7, %s817_s18, %s677_s26, %s677_s26, %s678_s29  }
  0xf8 PF: > { %p541_p0 = scmp.ge.s32.totalorder %s672_s20, 2  ;;  %s448_s5 = sand.u32 1, %s652_s15  }
  0xf9   : > { %s449_s6 = scalar_lea.sflag [#allocation3], %s448_s5 }
  0xfa   : > { %p538_p1 = pnand %p541_p0, %p751_p8 }
  0xfc   : > { %p539_p2 = pneg %p538_p1 }
  0xfe   : > { %647 = dma.done.wait (%p539_p2), %s449_s6, 1024  }
  0xff   : > { %649 = vsyncadd (%p539_p2), %s449_s6, 4294966272  ;;  %s17_s20 = sadd.s32 1, %s672_s20   ;;  %s869_s15 = smov %s656_s16 }
 0x100   : > { %p14_p3 = scmp.ge.s32.totalorder %s17_s20, 4   ;;  %s870_s16 = smov %s660_s17 }
 0x101   : > { %s871_s17 = smov %s757_s28  ;;  %s872_s18 = smov %s668_s19 }
 0x102   : > { %s873_s19 = smov %s875_s23  ;;  %16 = sbr.rel (!%p14_p3) target bundleno = 4 (0x4), region = 71 }
 0x107   :  { %454 = vsyncpa [#allocation3], 1 }
 0x108   :  { %456 = vsyncpa [#allocation3 + $0x1], 1 }

</bundles_post_ra>
